<compile_context>
chip_gen: v7x
topology: tpu7x:2x2x1
jax: 0.10.0
libtpu: 0.0.40
codegen_flags: <defaults>
</compile_context>

<pallas_src>
from functools import partial

import jax
import jax.numpy as jnp
from jax.experimental import pallas as pl
from jax.experimental.pallas import tpu as pltpu


def _round_up(x, m):
    return (x + m - 1) // m * m


# ----------------------------------------------------------------------------
# Fused Pallas kernel:
#   feat = relu( sum_{ki,kj} X_tap(ki,kj) @ Wb[ki,kj] + bb )   (9 MXU matmuls)
#   out  = relu( Wr . feat^T + br )                             (1x1 head)
# ----------------------------------------------------------------------------
def fused_backbone_head(xt, wb9, bb2, wr8, br2, *, s, tro, wo, cin, cb):
    """xt : [T, P, Rr, Wn, Cin] bf16  phase-split, haloed output-row tiles
       wb9: [9, Cin, Cb]  bf16        3x3 backbone taps, row-major (ki*3+kj)
       bb2: [1, Cb] f32   wr8: [8, Cb] bf16   br2: [1, 1] f32
       ->   [T, 1, TM] f32 with TM = tro*wo (backbone feat stays in VMEM)."""
    T, P, Rr, Wn, _ = xt.shape
    TM = tro * wo

    def kernel(xt_ref, wb_ref, bb_ref, wr_ref, br_ref, o_ref):
        # Backbone 3x3 / stride-s conv as 9 accumulating MXU matmuls over the
        # haloed, phase-split tile.  Tap (ki,kj) is a pure translation
        # (ki//s, kj//s) inside phase (ki%s, kj%s) -> only contiguous static
        # slices, no strided in-kernel gathers.
        acc = jnp.zeros((TM, cb), jnp.float32)
        for ki in range(3):
            for kj in range(3):
                p_idx = (ki % s) * s + (kj % s)
                di, dj = ki // s, kj // s
                win = xt_ref[0, p_idx, di:di + tro, dj:dj + wo, :]  # (tro,wo,cin)
                win = win.reshape(TM, cin)
                acc = acc + jnp.dot(win, wb_ref[ki * 3 + kj],
                                    preferred_element_type=jnp.float32)
        feat = jnp.maximum(acc + bb_ref[...], 0.0).astype(jnp.bfloat16)  # (TM,Cb)

        # 1x1 conv head: bf16 NT dot (contract Cb of both operands) -> (8, TM);
        # row 0 is the result, already lane-dense along TM.
        head = jax.lax.dot_general(
            wr_ref[...], feat,
            dimension_numbers=(((1,), (1,)), ((), ())),
            preferred_element_type=jnp.float32)                          # (8,TM)
        o_ref[...] = jnp.maximum(head[0:1, :] + br_ref[...], 0.0).reshape(1, 1, TM)

    # VMEM sizing (explicit, per review): account for the (16,128) physical
    # padding of the two minor dims and double-buffering of every block.
    blk_in = P * Rr * _round_up(Wn, 16) * 128 * 2          # bf16 input tile
    blk_w = 9 * _round_up(cin, 16) * 128 * 2               # backbone taps
    blk_out = 8 * _round_up(TM, 128) * 4                   # output row block
    blk_misc = 3 * 16 * 128 * 4                            # biases / wr8
    est = 2 * (blk_in + blk_w + blk_out + blk_misc)
    vmem_limit = int(min(48 * 2**20, max(8 * 2**20, 2 * est)))

    flops = T * (9 * 2 * TM * cin * cb + 2 * 8 * TM * cb)
    bytes_accessed = (xt.size * 2 + wb9.size * 2 + wr8.size * 2
                      + (bb2.size + br2.size) * 4 + T * TM * 4)

    return pl.pallas_call(
        kernel,
        out_shape=jax.ShapeDtypeStruct((T, 1, TM), jnp.float32),
        grid=(T,),
        in_specs=[
            pl.BlockSpec((1, P, Rr, Wn, cin), lambda i: (i, 0, 0, 0, 0)),
            pl.BlockSpec((9, cin, cb), lambda i: (0, 0, 0)),   # VMEM-resident
            pl.BlockSpec((1, cb), lambda i: (0, 0)),
            pl.BlockSpec((8, cb), lambda i: (0, 0)),
            pl.BlockSpec((1, 1), lambda i: (0, 0)),
        ],
        out_specs=pl.BlockSpec((1, 1, TM), lambda i: (i, 0, 0)),
        compiler_params=pltpu.CompilerParams(
            dimension_semantics=("parallel",),
            vmem_limit_bytes=vmem_limit),
        cost_estimate=pl.CostEstimate(
            flops=int(flops), transcendentals=0,
            bytes_accessed=int(bytes_accessed)),
    )(xt, wb9, bb2, wr8, br2)


# ----------------------------------------------------------------------------
# Regressor forward:  x -> backbone (conv3x3 s=reduction + relu) -> 1x1 conv+relu
# ----------------------------------------------------------------------------
@partial(jax.jit, static_argnames=("reduction",))
def regressor_forward(x_nchw, params, reduction):
    """x_nchw: [B, Cin, H, W] f32 -> [B, 1, H//reduction, W//reduction] f32."""
    wb, bb = params["backbone_w"], params["backbone_b"]   # [3,3,Cin,Cb], [Cb]
    wr, br = params["reg_w"], params["reg_b"]             # [Cb,1], [1]
    B, Cin, H, W = x_nchw.shape
    s = int(reduction)
    Cb = bb.shape[0]
    Ho = (H + 2 - 3) // s + 1
    Wo = (W + 2 - 3) // s + 1
    hal = 2 // s          # max tap translation inside a phase (3x3 kernel)
    P = s * s

    # Single fused JAX prolog over x: NCHW->NHWC, bf16 cast, pad(1), then the
    # stride-phase split + haloed row-tile gather (replaces im2col).
    x = jnp.transpose(x_nchw, (0, 2, 3, 1)).astype(jnp.bfloat16)
    xp = jnp.pad(x, ((0, 0), (1, 1), (1, 1), (0, 0)))          # [B,H+2,W+2,Cin]

    # Phase (p,q)[i,j,:] = xp[i*s+p, j*s+q, :]; tap (ki,kj) then reads phase
    # (ki%s, kj%s) at translation (ki//s, kj//s) -> contiguous kernel slices.
    Hn, Wn = Ho + hal, Wo + hal
    phases = []
    for p in range(s):
        for q in range(s):
            ph = xp[:, p::s, q::s, :][:, :Hn, :Wn, :]
            ph = jnp.pad(ph, ((0, 0), (0, Hn - ph.shape[1]),
                              (0, Wn - ph.shape[2]), (0, 0)))
            phases.append(ph)
    xph = jnp.stack(phases, axis=1)                            # [B,P,Hn,Wn,Cin]

    # Output-row tiling with a `hal`-row halo: per-tile matmul M ~<= 512 and
    # the haloed block capped near 4 MiB (VMEM headroom on v7x/v5e).
    TRo = max(1, min(Ho, 512 // max(Wo, 1)))
    while TRo > 1 and P * (TRo + hal) * _round_up(Wn, 16) * 128 * 2 > 4 * 2**20:
        TRo = max(1, TRo // 2)
    n_t = -(-Ho // TRo)
    Ho_pad = n_t * TRo
    Rr = TRo + hal
    xph = jnp.pad(xph, ((0, 0), (0, 0), (0, Ho_pad + hal - Hn), (0, 0), (0, 0)))
    tiles = [xph[:, :, t * TRo: t * TRo + Rr] for t in range(n_t)]
    xt = jnp.stack(tiles, axis=1).reshape(B * n_t, P, Rr, Wn, Cin)

    wb9 = wb.reshape(9, Cin, Cb).astype(jnp.bfloat16)          # tap-major = wb[ki,kj]
    bb2 = bb.reshape(1, Cb).astype(jnp.float32)
    wr8 = jnp.broadcast_to(wr.reshape(1, Cb), (8, Cb)).astype(jnp.bfloat16)
    br2 = br.reshape(1, 1).astype(jnp.float32)

    out = fused_backbone_head(xt, wb9, bb2, wr8, br2,
                              s=s, tro=TRo, wo=Wo, cin=Cin, cb=Cb)  # [T,1,TM]

    # Padded (>= Ho) rows are per-row-independent garbage; slice them off.
    out = out.reshape(B, Ho_pad, Wo)[:, :Ho, :]
    return out[:, None, :, :]                                  # NCHW [B,1,Ho,Wo]


# ----------------------------------------------------------------------------
# Reference-only helper (f32, plain JAX) and deterministic parameter init.
# ----------------------------------------------------------------------------
def im2col_nhwc(x_nhwc, kh, kw, stride, pad):
    B, H, W, C = x_nhwc.shape
    xp = jnp.pad(x_nhwc, ((0, 0), (pad, pad), (pad, pad), (0, 0)))
    Ho = (H + 2 * pad - kh) // stride + 1
    Wo = (W + 2 * pad - kw) // stride + 1
    patches = []
    for i in range(kh):
        for j in range(kw):
            patches.append(
                xp[:, i:i + Ho * stride:stride, j:j + Wo * stride:stride, :])
    cols = jnp.concatenate(patches, axis=-1)
    return cols.reshape(B * Ho * Wo, kh * kw * C), Ho, Wo


def init_params(key, cin, channels):
    k1, k2, k3, k4 = jax.random.split(key, 4)
    return {
        "backbone_w": 0.1 * jax.random.normal(k1, (3, 3, cin, channels), jnp.float32),
        "backbone_b": 0.01 * jax.random.normal(k2, (channels,), jnp.float32),
        "reg_w": 0.1 * jax.random.normal(k3, (channels, 1), jnp.float32),
        "reg_b": 0.01 * jax.random.normal(k4, (1,), jnp.float32),
    }


if __name__ == "__main__":
    B, Cin, H, W = 2, 4, 16, 16
    channels, reduction = 32, 2

    key = jax.random.PRNGKey(0)
    kx, kp = jax.random.split(key)
    x = jax.random.normal(kx, (B, Cin, H, W), jnp.float32)
    params = init_params(kp, Cin, channels)

    out = regressor_forward(x, params, reduction)
    out = jax.block_until_ready(out)

    # Plain-JAX f32 reference of the same math (kernel uses bf16 matmul inputs,
    # hence the relaxed tolerance).
    x_nhwc = jnp.transpose(x, (0, 2, 3, 1)).astype(jnp.float32)
    cols_ref, Ho, Wo = im2col_nhwc(x_nhwc, 3, 3, reduction, 1)
    feat_ref = jnp.maximum(
        cols_ref @ params["backbone_w"].reshape(9 * Cin, channels)
        + params["backbone_b"], 0.0)
    head_ref = jnp.maximum(feat_ref @ params["reg_w"] + params["reg_b"], 0.0)
    ref = jnp.transpose(head_ref.reshape(B, Ho, Wo, 1), (0, 3, 1, 2))

    assert out.shape == (B, 1, H // reduction, W // reduction), out.shape
    assert jnp.allclose(out, ref, atol=2e-2, rtol=2e-2), float(
        jnp.max(jnp.abs(out - ref)))
    print("KERNEL_OK")
</pallas_src>

<mosaic_0001>
module attributes {stable_mosaic.version = 11 : i64} {
  func.func @kernel(%arg0: i32, %arg1: memref<1x4x9x9x4xbf16, #tpu.memory_space<vmem>>, %arg2: memref<9x4x32xbf16, #tpu.memory_space<vmem>>, %arg3: memref<1x32xf32, #tpu.memory_space<vmem>>, %arg4: memref<8x32xbf16, #tpu.memory_space<vmem>>, %arg5: memref<1x1xf32, #tpu.memory_space<vmem>>, %arg6: memref<1x1x64xf32, #tpu.memory_space<vmem>>) attributes {dimension_semantics = [#tpu.dimension_semantics<parallel>], iteration_bounds = array<i64: 2>, scalar_prefetch = 0 : i64, scratch_operands = 0 : i64, tpu.core_type = #tpu.core_type<tc>, window_params = [{transform_indices = @transform_0, window_bounds = array<i64: 1, 4, 9, 9, 4>}, {pipeline_mode = #tpu.pipeline_mode<synchronous>, transform_indices = @transform_1, window_bounds = array<i64: 9, 4, 32>}, {pipeline_mode = #tpu.pipeline_mode<synchronous>, transform_indices = @transform_2, window_bounds = array<i64: 1, 32>}, {pipeline_mode = #tpu.pipeline_mode<synchronous>, transform_indices = @transform_3, window_bounds = array<i64: 8, 32>}, {pipeline_mode = #tpu.pipeline_mode<synchronous>, transform_indices = @transform_4, window_bounds = array<i64: 1, 1>}, {transform_indices = @transform_5, window_bounds = array<i64: 1, 1, 64>}]} {
    %cst = arith.constant 0.000000e+00 : f32
    %0 = vector.broadcast %cst : f32 to vector<64x32xf32>
    %c0 = arith.constant 0 : index
    %c0_0 = arith.constant 0 : index
    %c0_1 = arith.constant 0 : index
    %c0_2 = arith.constant 0 : index
    %c0_3 = arith.constant 0 : index
    %1 = vector.load %arg1[%c0, %c0_0, %c0_1, %c0_2, %c0_3] : memref<1x4x9x9x4xbf16, #tpu.memory_space<vmem>>, vector<1x1x8x8x4xbf16>
    %2 = vector.shape_cast %1 : vector<1x1x8x8x4xbf16> to vector<8x8x4xbf16>
    %3 = vector.shape_cast %2 : vector<8x8x4xbf16> to vector<64x4xbf16>
    %c0_4 = arith.constant 0 : index
    %c0_5 = arith.constant 0 : index
    %c0_6 = arith.constant 0 : index
    %4 = vector.load %arg2[%c0_4, %c0_5, %c0_6] : memref<9x4x32xbf16, #tpu.memory_space<vmem>>, vector<1x4x32xbf16>
    %5 = vector.shape_cast %4 : vector<1x4x32xbf16> to vector<4x32xbf16>
    %cst_7 = arith.constant dense<0.000000e+00> : vector<64x32xf32>
    %6 = tpu.matmul %3, %5, %cst_7 {dimension_numbers = #tpu.dot_dimension_numbers<[1], [0], [0], [1], [0, 0, 1, 1], [], []>} : vector<64x4xbf16>, vector<4x32xbf16>, vector<64x32xf32> -> vector<64x32xf32>
    %7 = arith.addf %0, %6 : vector<64x32xf32>
    %c0_8 = arith.constant 0 : index
    %c1 = arith.constant 1 : index
    %c0_9 = arith.constant 0 : index
    %c0_10 = arith.constant 0 : index
    %c0_11 = arith.constant 0 : index
    %8 = vector.load %arg1[%c0_8, %c1, %c0_9, %c0_10, %c0_11] : memref<1x4x9x9x4xbf16, #tpu.memory_space<vmem>>, vector<1x1x8x8x4xbf16>
    %9 = vector.shape_cast %8 : vector<1x1x8x8x4xbf16> to vector<8x8x4xbf16>
    %10 = vector.shape_cast %9 : vector<8x8x4xbf16> to vector<64x4xbf16>
    %c1_12 = arith.constant 1 : index
    %c0_13 = arith.constant 0 : index
    %c0_14 = arith.constant 0 : index
    %11 = vector.load %arg2[%c1_12, %c0_13, %c0_14] : memref<9x4x32xbf16, #tpu.memory_space<vmem>>, vector<1x4x32xbf16>
    %12 = vector.shape_cast %11 : vector<1x4x32xbf16> to vector<4x32xbf16>
    %cst_15 = arith.constant dense<0.000000e+00> : vector<64x32xf32>
    %13 = tpu.matmul %10, %12, %cst_15 {dimension_numbers = #tpu.dot_dimension_numbers<[1], [0], [0], [1], [0, 0, 1, 1], [], []>} : vector<64x4xbf16>, vector<4x32xbf16>, vector<64x32xf32> -> vector<64x32xf32>
    %14 = arith.addf %7, %13 : vector<64x32xf32>
    %c0_16 = arith.constant 0 : index
    %c0_17 = arith.constant 0 : index
    %c0_18 = arith.constant 0 : index
    %c1_19 = arith.constant 1 : index
    %c0_20 = arith.constant 0 : index
    %15 = vector.load %arg1[%c0_16, %c0_17, %c0_18, %c1_19, %c0_20] : memref<1x4x9x9x4xbf16, #tpu.memory_space<vmem>>, vector<1x1x8x8x4xbf16>
    %16 = vector.shape_cast %15 : vector<1x1x8x8x4xbf16> to vector<8x8x4xbf16>
    %17 = vector.shape_cast %16 : vector<8x8x4xbf16> to vector<64x4xbf16>
    %c2 = arith.constant 2 : index
    %c0_21 = arith.constant 0 : index
    %c0_22 = arith.constant 0 : index
    %18 = vector.load %arg2[%c2, %c0_21, %c0_22] : memref<9x4x32xbf16, #tpu.memory_space<vmem>>, vector<1x4x32xbf16>
    %19 = vector.shape_cast %18 : vector<1x4x32xbf16> to vector<4x32xbf16>
    %cst_23 = arith.constant dense<0.000000e+00> : vector<64x32xf32>
    %20 = tpu.matmul %17, %19, %cst_23 {dimension_numbers = #tpu.dot_dimension_numbers<[1], [0], [0], [1], [0, 0, 1, 1], [], []>} : vector<64x4xbf16>, vector<4x32xbf16>, vector<64x32xf32> -> vector<64x32xf32>
    %21 = arith.addf %14, %20 : vector<64x32xf32>
    %c0_24 = arith.constant 0 : index
    %c2_25 = arith.constant 2 : index
    %c0_26 = arith.constant 0 : index
    %c0_27 = arith.constant 0 : index
    %c0_28 = arith.constant 0 : index
    %22 = vector.load %arg1[%c0_24, %c2_25, %c0_26, %c0_27, %c0_28] : memref<1x4x9x9x4xbf16, #tpu.memory_space<vmem>>, vector<1x1x8x8x4xbf16>
    %23 = vector.shape_cast %22 : vector<1x1x8x8x4xbf16> to vector<8x8x4xbf16>
    %24 = vector.shape_cast %23 : vector<8x8x4xbf16> to vector<64x4xbf16>
    %c3 = arith.constant 3 : index
    %c0_29 = arith.constant 0 : index
    %c0_30 = arith.constant 0 : index
    %25 = vector.load %arg2[%c3, %c0_29, %c0_30] : memref<9x4x32xbf16, #tpu.memory_space<vmem>>, vector<1x4x32xbf16>
    %26 = vector.shape_cast %25 : vector<1x4x32xbf16> to vector<4x32xbf16>
    %cst_31 = arith.constant dense<0.000000e+00> : vector<64x32xf32>
    %27 = tpu.matmul %24, %26, %cst_31 {dimension_numbers = #tpu.dot_dimension_numbers<[1], [0], [0], [1], [0, 0, 1, 1], [], []>} : vector<64x4xbf16>, vector<4x32xbf16>, vector<64x32xf32> -> vector<64x32xf32>
    %28 = arith.addf %21, %27 : vector<64x32xf32>
    %c0_32 = arith.constant 0 : index
    %c3_33 = arith.constant 3 : index
    %c0_34 = arith.constant 0 : index
    %c0_35 = arith.constant 0 : index
    %c0_36 = arith.constant 0 : index
    %29 = vector.load %arg1[%c0_32, %c3_33, %c0_34, %c0_35, %c0_36] : memref<1x4x9x9x4xbf16, #tpu.memory_space<vmem>>, vector<1x1x8x8x4xbf16>
    %30 = vector.shape_cast %29 : vector<1x1x8x8x4xbf16> to vector<8x8x4xbf16>
    %31 = vector.shape_cast %30 : vector<8x8x4xbf16> to vector<64x4xbf16>
    %c4 = arith.constant 4 : index
    %c0_37 = arith.constant 0 : index
    %c0_38 = arith.constant 0 : index
    %32 = vector.load %arg2[%c4, %c0_37, %c0_38] : memref<9x4x32xbf16, #tpu.memory_space<vmem>>, vector<1x4x32xbf16>
    %33 = vector.shape_cast %32 : vector<1x4x32xbf16> to vector<4x32xbf16>
    %cst_39 = arith.constant dense<0.000000e+00> : vector<64x32xf32>
    %34 = tpu.matmul %31, %33, %cst_39 {dimension_numbers = #tpu.dot_dimension_numbers<[1], [0], [0], [1], [0, 0, 1, 1], [], []>} : vector<64x4xbf16>, vector<4x32xbf16>, vector<64x32xf32> -> vector<64x32xf32>
    %35 = arith.addf %28, %34 : vector<64x32xf32>
    %c0_40 = arith.constant 0 : index
    %c2_41 = arith.constant 2 : index
    %c0_42 = arith.constant 0 : index
    %c1_43 = arith.constant 1 : index
    %c0_44 = arith.constant 0 : index
    %36 = vector.load %arg1[%c0_40, %c2_41, %c0_42, %c1_43, %c0_44] : memref<1x4x9x9x4xbf16, #tpu.memory_space<vmem>>, vector<1x1x8x8x4xbf16>
    %37 = vector.shape_cast %36 : vector<1x1x8x8x4xbf16> to vector<8x8x4xbf16>
    %38 = vector.shape_cast %37 : vector<8x8x4xbf16> to vector<64x4xbf16>
    %c5 = arith.constant 5 : index
    %c0_45 = arith.constant 0 : index
    %c0_46 = arith.constant 0 : index
    %39 = vector.load %arg2[%c5, %c0_45, %c0_46] : memref<9x4x32xbf16, #tpu.memory_space<vmem>>, vector<1x4x32xbf16>
    %40 = vector.shape_cast %39 : vector<1x4x32xbf16> to vector<4x32xbf16>
    %cst_47 = arith.constant dense<0.000000e+00> : vector<64x32xf32>
    %41 = tpu.matmul %38, %40, %cst_47 {dimension_numbers = #tpu.dot_dimension_numbers<[1], [0], [0], [1], [0, 0, 1, 1], [], []>} : vector<64x4xbf16>, vector<4x32xbf16>, vector<64x32xf32> -> vector<64x32xf32>
    %42 = arith.addf %35, %41 : vector<64x32xf32>
    %c0_48 = arith.constant 0 : index
    %c0_49 = arith.constant 0 : index
    %c1_50 = arith.constant 1 : index
    %c0_51 = arith.constant 0 : index
    %c0_52 = arith.constant 0 : index
    %43 = vector.load %arg1[%c0_48, %c0_49, %c1_50, %c0_51, %c0_52] : memref<1x4x9x9x4xbf16, #tpu.memory_space<vmem>>, vector<1x1x8x8x4xbf16>
    %44 = vector.shape_cast %43 : vector<1x1x8x8x4xbf16> to vector<8x8x4xbf16>
    %45 = vector.shape_cast %44 : vector<8x8x4xbf16> to vector<64x4xbf16>
    %c6 = arith.constant 6 : index
    %c0_53 = arith.constant 0 : index
    %c0_54 = arith.constant 0 : index
    %46 = vector.load %arg2[%c6, %c0_53, %c0_54] : memref<9x4x32xbf16, #tpu.memory_space<vmem>>, vector<1x4x32xbf16>
    %47 = vector.shape_cast %46 : vector<1x4x32xbf16> to vector<4x32xbf16>
    %cst_55 = arith.constant dense<0.000000e+00> : vector<64x32xf32>
    %48 = tpu.matmul %45, %47, %cst_55 {dimension_numbers = #tpu.dot_dimension_numbers<[1], [0], [0], [1], [0, 0, 1, 1], [], []>} : vector<64x4xbf16>, vector<4x32xbf16>, vector<64x32xf32> -> vector<64x32xf32>
    %49 = arith.addf %42, %48 : vector<64x32xf32>
    %c0_56 = arith.constant 0 : index
    %c1_57 = arith.constant 1 : index
    %c1_58 = arith.constant 1 : index
    %c0_59 = arith.constant 0 : index
    %c0_60 = arith.constant 0 : index
    %50 = vector.load %arg1[%c0_56, %c1_57, %c1_58, %c0_59, %c0_60] : memref<1x4x9x9x4xbf16, #tpu.memory_space<vmem>>, vector<1x1x8x8x4xbf16>
    %51 = vector.shape_cast %50 : vector<1x1x8x8x4xbf16> to vector<8x8x4xbf16>
    %52 = vector.shape_cast %51 : vector<8x8x4xbf16> to vector<64x4xbf16>
    %c7 = arith.constant 7 : index
    %c0_61 = arith.constant 0 : index
    %c0_62 = arith.constant 0 : index
    %53 = vector.load %arg2[%c7, %c0_61, %c0_62] : memref<9x4x32xbf16, #tpu.memory_space<vmem>>, vector<1x4x32xbf16>
    %54 = vector.shape_cast %53 : vector<1x4x32xbf16> to vector<4x32xbf16>
    %cst_63 = arith.constant dense<0.000000e+00> : vector<64x32xf32>
    %55 = tpu.matmul %52, %54, %cst_63 {dimension_numbers = #tpu.dot_dimension_numbers<[1], [0], [0], [1], [0, 0, 1, 1], [], []>} : vector<64x4xbf16>, vector<4x32xbf16>, vector<64x32xf32> -> vector<64x32xf32>
    %56 = arith.addf %49, %55 : vector<64x32xf32>
    %c0_64 = arith.constant 0 : index
    %c0_65 = arith.constant 0 : index
    %c1_66 = arith.constant 1 : index
    %c1_67 = arith.constant 1 : index
    %c0_68 = arith.constant 0 : index
    %57 = vector.load %arg1[%c0_64, %c0_65, %c1_66, %c1_67, %c0_68] : memref<1x4x9x9x4xbf16, #tpu.memory_space<vmem>>, vector<1x1x8x8x4xbf16>
    %58 = vector.shape_cast %57 : vector<1x1x8x8x4xbf16> to vector<8x8x4xbf16>
    %59 = vector.shape_cast %58 : vector<8x8x4xbf16> to vector<64x4xbf16>
    %c8 = arith.constant 8 : index
    %c0_69 = arith.constant 0 : index
    %c0_70 = arith.constant 0 : index
    %60 = vector.load %arg2[%c8, %c0_69, %c0_70] : memref<9x4x32xbf16, #tpu.memory_space<vmem>>, vector<1x4x32xbf16>
    %61 = vector.shape_cast %60 : vector<1x4x32xbf16> to vector<4x32xbf16>
    %cst_71 = arith.constant dense<0.000000e+00> : vector<64x32xf32>
    %62 = tpu.matmul %59, %61, %cst_71 {dimension_numbers = #tpu.dot_dimension_numbers<[1], [0], [0], [1], [0, 0, 1, 1], [], []>} : vector<64x4xbf16>, vector<4x32xbf16>, vector<64x32xf32> -> vector<64x32xf32>
    %63 = arith.addf %56, %62 : vector<64x32xf32>
    %c0_72 = arith.constant 0 : index
    %c0_73 = arith.constant 0 : index
    %64 = vector.load %arg3[%c0_72, %c0_73] : memref<1x32xf32, #tpu.memory_space<vmem>>, vector<1x32xf32>
    %65 = vector.broadcast %64 : vector<1x32xf32> to vector<64x32xf32>
    %66 = arith.addf %63, %65 : vector<64x32xf32>
    %cst_74 = arith.constant 0.000000e+00 : f32
    %67 = vector.broadcast %cst_74 : f32 to vector<64x32xf32>
    %68 = arith.maximumf %66, %67 : vector<64x32xf32>
    %69 = arith.truncf %68 : vector<64x32xf32> to vector<64x32xbf16>
    %c0_75 = arith.constant 0 : index
    %c0_76 = arith.constant 0 : index
    %70 = vector.load %arg4[%c0_75, %c0_76] : memref<8x32xbf16, #tpu.memory_space<vmem>>, vector<8x32xbf16>
    %cst_77 = arith.constant dense<0.000000e+00> : vector<8x64xf32>
    %71 = tpu.matmul %70, %69, %cst_77 {dimension_numbers = #tpu.dot_dimension_numbers<[1], [1], [0], [0], [0, 0, 1, 0], [], []>} : vector<8x32xbf16>, vector<64x32xbf16>, vector<8x64xf32> -> vector<8x64xf32>
    %72 = vector.extract_strided_slice %71 {offsets = [0, 0], sizes = [1, 64], strides = [1, 1]} : vector<8x64xf32> to vector<1x64xf32>
    %c0_78 = arith.constant 0 : index
    %c0_79 = arith.constant 0 : index
    %73 = vector.load %arg5[%c0_78, %c0_79] : memref<1x1xf32, #tpu.memory_space<vmem>>, vector<1x1xf32>
    %74 = vector.broadcast %73 : vector<1x1xf32> to vector<1x64xf32>
    %75 = arith.addf %72, %74 : vector<1x64xf32>
    %cst_80 = arith.constant 0.000000e+00 : f32
    %76 = vector.broadcast %cst_80 : f32 to vector<1x64xf32>
    %77 = arith.maximumf %75, %76 : vector<1x64xf32>
    %78 = vector.shape_cast %77 : vector<1x64xf32> to vector<1x1x64xf32>
    %c0_81 = arith.constant 0 : index
    %c0_82 = arith.constant 0 : index
    %c0_83 = arith.constant 0 : index
    %79 = vector.load %arg6[%c0_81, %c0_82, %c0_83] : memref<1x1x64xf32, #tpu.memory_space<vmem>>, vector<1x1x64xf32>
    tpu.vector_store %arg6[%c0_81, %c0_82, %c0_83], %78 {strides = array<i32>} : memref<1x1x64xf32, #tpu.memory_space<vmem>>, vector<1x1x64xf32>,
    return
  }
  func.func @transform_0(%arg0: i32) -> (i32, i32, i32, i32, i32) {
    %c0_i32 = arith.constant 0 : i32
    %c0_i32_0 = arith.constant 0 : i32
    %c0_i32_1 = arith.constant 0 : i32
    %c0_i32_2 = arith.constant 0 : i32
    %c0_i32_3 = arith.constant 0 : i32
    return %arg0, %c0_i32, %c0_i32_0, %c0_i32_1, %c0_i32_2 : i32, i32, i32, i32, i32
  }
  func.func @transform_1(%arg0: i32) -> (i32, i32, i32) {
    %c0_i32 = arith.constant 0 : i32
    %c0_i32_0 = arith.constant 0 : i32
    %c0_i32_1 = arith.constant 0 : i32
    %c0_i32_2 = arith.constant 0 : i32
    return %c0_i32, %c0_i32_0, %c0_i32_1 : i32, i32, i32
  }
  func.func @transform_2(%arg0: i32) -> (i32, i32) {
    %c0_i32 = arith.constant 0 : i32
    %c0_i32_0 = arith.constant 0 : i32
    %c0_i32_1 = arith.constant 0 : i32
    return %c0_i32, %c0_i32_0 : i32, i32
  }
  func.func @transform_3(%arg0: i32) -> (i32, i32) {
    %c0_i32 = arith.constant 0 : i32
    %c0_i32_0 = arith.constant 0 : i32
    %c0_i32_1 = arith.constant 0 : i32
    return %c0_i32, %c0_i32_0 : i32, i32
  }
  func.func @transform_4(%arg0: i32) -> (i32, i32) {
    %c0_i32 = arith.constant 0 : i32
    %c0_i32_0 = arith.constant 0 : i32
    %c0_i32_1 = arith.constant 0 : i32
    return %c0_i32, %c0_i32_0 : i32, i32
  }
  func.func @transform_5(%arg0: i32) -> (i32, i32, i32) {
    %c0_i32 = arith.constant 0 : i32
    %c0_i32_0 = arith.constant 0 : i32
    %c0_i32_1 = arith.constant 0 : i32
    return %arg0, %c0_i32, %c0_i32_0 : i32, i32, i32
  }
}

</mosaic_0001>

<bundles_post_ra>
// kernel: regressor_forward.1
= control target key start
LH: loop header
LB: loop body
LE: loop exit
PB: predicated region body
PF: predicated region fallthrough
CT: control target
= control target key end

     0   :  { %s2228_s20 = smov 0   ;;  %s2483_s0 = inlined_call_operand.vmem [shape: bf16[2,4,9,9,4], index: 0, kind: input, shape index: {}]   ;;  %s2484_s1 = inlined_call_operand.vmem [shape: bf16[9,4,32], index: 1, kind: input, shape index: {}]   ;;  %s2485_s2 = inlined_call_operand.vmem [shape: f32[1,32], index: 2, kind: input, shape index: {}]   ;;  %s2486_s3 = inlined_call_operand.vmem [shape: bf16[8,32], index: 3, kind: input, shape index: {}]   ;;  %s2487_s4 = inlined_call_operand.<no memory space> [shape: f32[1,1], index: 4, kind: input, shape index: {}]   ;;  %s2488_s5 = inlined_call_operand.vmem [shape: f32[2,1,64], index: 5, kind: output, shape index: {}]  }
   0x1   :  { %v10_v0 = vstv %s2487_s4 }
   0x2   :  { %11 = vst [vmem:[#allocation2] sm:$0x1] %v10_v0 }
   0x3 LB: > { %s1760_s21 = sadd.s32 4294967295, %s2190_s20   ;;  %p1764_p0 = scmp.ge.s32.totalorder %s2190_s20, 1  ;;  %s2190_s20 = sphi %s2228_s20, %s17_s20  }
   0x4   : > { %p189_p1 = scmp.lt.s32.totalorder %s2190_s20, 3 }
   0x6   : > { %p190_p2 = pnand %p1764_p0, %p189_p1 }
   0x7   : > { %vm277_vm0 = vcmask (!%p190_p2), 1041408   ;;  %v1825_v1 = vld [vmem:[%s2484_s1 + $0x8] sm:$0x3] (!%p190_p2)  ;;  %v1774_v2 = vld [vmem:[%s2484_s1 + $0x2] sm:$0x3] (!%p190_p2)  ;;  %p215_p3 = scmp.lt.s32.totalorder (!%p190_p2), %s1760_s21, 1 }
   0x8   : > { %193 = sbr.rel (%p190_p2) target bundleno = 561 (0x231), region = 40  ;;  %2142 = vmatprep.subr.msk.bf16.mxu0 (!%p190_p2), %vm277_vm0, %v1825_v1  ;;  %2138 = vmatprep.subr.msk.bf16.mxu1 (!%p190_p2), %vm277_vm0, %v1774_v2  ;;  %v842_v3 = vsel (!%p190_p2), %vm277_vm0, %v1825_v1, 0  ;;  %v279_v4 = vsel (!%p190_p2), %vm277_vm0, %v1774_v2, 0  ;;  %v1850_v5 = vld [vmem:[%s2484_s1 + $0xa] sm:$0x3] (!%p190_p2)  ;;  %vm264_vm1 = vcmask (!%p190_p2), 31744  }
   0x9   : > { %2013 = vmatpush3.bf16.msra.mxu0 (!%p190_p2), %v842_v3  ;;  %1973 = vmatpush3.bf16.msra.mxu1 (!%p190_p2), %v279_v4  ;;  %v232_v6 = vld [vmem:[%s2484_s1] sm:$0x3] (!%p190_p2)  ;;  %v1867_v7 = vld [vmem:[%s2484_s1 + $0xc] sm:$0x3] (!%p190_p2)  ;;  %v1072_v8 = vsel (!%p190_p2), %vm277_vm0, %v1850_v5, 0  ;;  %vm2193_vm5 = vmmov (!%p190_p2), 0  }
   0xa   : > { %2143 = vmatprep.subr.msk.bf16.mxu0 (!%p190_p2), %vm277_vm0, %v1850_v5  ;;  %2139 = vmatprep.subr.msk.bf16.mxu1 (!%p190_p2), %vm277_vm0, %v232_v6  ;;  %v379_v9 = vsel (!%p190_p2), %vm277_vm0, %v232_v6, 0  ;;  %v2268_v10 = vsel (!%p190_p2), %vm277_vm0, %v1867_v7, 0  ;;  %v1791_v15 = vld [vmem:[%s2484_s1 + $0x4] sm:$0x3] (!%p190_p2)  ;;  %vm462_vm2 = vsmask.f32 (!%p190_p2), 3328 }
   0xb   : > { %vm463_vm3 = vsmask.f32 (!%p190_p2), 7440  ;;  %v604_v58 = vsel (!%p190_p2), %vm277_vm0, %v1791_v15, 0  ;;  %v2313_v59 = vld [vmem:[%s2484_s1 + $0xe] sm:$0x3] (!%p190_p2)  ;;  %vm1643_vm6 = vcmask (!%p190_p2), 261120  }
   0xc   : > { %vm2304_vm4 = vmor (!%p190_p2), %vm462_vm2, %vm463_vm3  ;;  %v2318_v60 = vld [vmem:[%s2484_s1 + $0x6] sm:$0x3] (!%p190_p2)  ;;  %vm1711_vm7 = vcmask (!%p190_p2), 516096  }
   0xf   : > { %s2492_s21 = smov (!%p215_p3, %s1760_s21), 1 }
  0x10   : > { %s2147_s6 = smul.u32 288, %s2492_s21  ;;  %s222_s25 = scalar_lea.vmem %s2488_s5, %s2492_s21 }
  0x12   : > { %s2263_s9 = scalar_lea.vmem %s2483_s0, %s2147_s6 }
  0x13   : > { %v2160_v11 = vld [vmem:[%s2263_s9 + $0x48] ss:$8 sps:$4 sm:$0xff]   ;;  %v2161_v12 = vld [vmem:[%s2263_s9 + $0xd8] ss:$8 sps:$4 sm:$0xff]   ;;  %v1835_v22 = vld [vmem:[%s2263_s9 + $0x94] sm:$0x1] }
  0x14   : > { %1974 = vmatprep.mubr.msk.bf16.mxu1 %vm264_vm1, %v2160_v11  ;;  %v2162_v13 = vld [vmem:[%s2263_s9 + $0x58] ss:$8 sps:$4 sm:$0xff]   ;;  %2014 = vmatprep.mubr.msk.bf16.mxu0 %vm264_vm1, %v2161_v12  ;;  %v2163_v14 = vld [vmem:[%s2263_s9 + $0xe8] ss:$8 sps:$4 sm:$0xff]   ;;  %v1837_v24 = vld [vmem:[%s2263_s9 + $0x9c] sm:$0x1] }
  0x15   : > { %1975 = vmatmul.mubr.msk.bf16.vlgmr.msra.gmra.mrb[0].mxu1 %vm264_vm1, %v2162_v13  ;;  %v2164_v16 = vld [vmem:[%s2263_s9 + $0x68] ss:$8 sps:$4 sm:$0xff]   ;;  %2015 = vmatmul.mubr.msk.bf16.vlgmr.msra.gmra.mrb[0].mxu0 %vm264_vm1, %v2163_v14  ;;  %v2165_v17 = vld [vmem:[%s2263_s9 + $0xf8] ss:$8 sps:$4 sm:$0xff]   ;;  %v943_v27 = vshll.u32 %v1835_v22, 16  ;;  %v957_v30 = vshll.u32 %v1837_v24, 16 }
  0x16   : > { %1983 = vmatpush3.bf16.msra.mxu1 %v379_v9  ;;  %2023 = vmatpush3.bf16.msra.mxu0 %v1072_v8  ;;  %v2166_v18 = vld [vmem:[%s2263_s9 + $0x78] ss:$8 sps:$4 sm:$0xff]   ;;  %v2167_v19 = vld [vmem:[%s2263_s9 + $0x108] ss:$8 sps:$4 sm:$0xff]   ;;  %v1839_v38 = vld [vmem:[%s2263_s9 + $0xa4] sm:$0x1] }
  0x17   : > { %1978 = vmatprep.mubr.msk.bf16.mxu1 %vm264_vm1, %v2164_v16  ;;  %2018 = vmatprep.mubr.msk.bf16.mxu0 %vm264_vm1, %v2165_v17  ;;  %v2168_v20 = vld [vmem:[%s2263_s9] ss:$8 sps:$4 sm:$0xff]   ;;  %v1834_v21 = vld [vmem:[%s2263_s9 + $0x90] sm:$0xf]  ;;  %v1836_v23 = vld [vmem:[%s2263_s9 + $0x98] sm:$0xf] }
  0x18   : > { %2144 = vmatprep.subr.msk.bf16.mxu0 %vm277_vm0, %v1867_v7  ;;  %2140 = vmatprep.subr.msk.bf16.mxu1 %vm277_vm0, %v1791_v15  ;;  %v934_v25 = vshrl.u32 %v1834_v21, 16  ;;  %v937_v26 = vshll.u32 %v1834_v21, 16  ;;  %v948_v28 = vshrl.u32 %v1836_v23, 16  ;;  %v951_v29 = vshll.u32 %v1836_v23, 16  ;;  %v1838_v37 = vld [vmem:[%s2263_s9 + $0xa0] sm:$0xf] }
  0x19   : > { %v945_v33 = vrot.slane %v943_v27, 5  ;;  %v959_v36 = vrot.slane %v957_v30, 5  ;;  %v2169_v40 = vld [vmem:[%s2263_s9 + $0x10] ss:$8 sps:$4 sm:$0xff]   ;;  %v1840_v41 = vld [vmem:[%s2263_s9 + $0xa8] sm:$0xf] }
  0x1a   : > { %v936_v31 = vrot.slane %v934_v25, 4  ;;  %v939_v32 = vrot.slane %v937_v26, 5  ;;  %v950_v34 = vrot.slane %v948_v28, 4  ;;  %v953_v35 = vrot.slane %v951_v29, 5  ;;  %v1841_v42 = vld [vmem:[%s2263_s9 + $0xac] sm:$0x1] }
  0x1b   : > { %v962_v43 = vshrl.u32 %v1838_v37, 16  ;;  %v965_v44 = vshll.u32 %v1838_v37, 16  ;;  %v971_v47 = vshll.u32 %v1839_v38, 16  ;;  %v976_v48 = vshrl.u32 %v1840_v41, 16  ;;  %v2170_v57 = vld [vmem:[%s2263_s9 + $0x20] ss:$8 sps:$4 sm:$0xff]  }
  0x1c   : > { %v940_v39 = vor.u32 %v939_v32, %v936_v31  ;;  %v954_v46 = vor.u32 %v953_v35, %v950_v34  ;;  %v979_v49 = vshll.u32 %v1840_v41, 16  ;;  %v985_v53 = vshll.u32 %v1841_v42, 16  ;;  %v1842_v1 = vld [vmem:[%s2263_s9 + $0xb0] sm:$0xf]  ;;  %v1843_v2 = vld [vmem:[%s2263_s9 + $0xb4] sm:$0x1] }
  0x1d   : > { %1979 = vmatmul.mubr.msk.bf16.gmra.mrb[4].mxu1 %vm264_vm1, %v2166_v18  ;;  %2019 = vmatmul.mubr.msk.bf16.gmra.mrb[4].mxu0 %vm264_vm1, %v2167_v19  ;;  %v964_v51 = vrot.slane %v962_v43, 4  ;;  %v967_v52 = vrot.slane %v965_v44, 5  ;;  %v978_v55 = vrot.slane %v976_v48, 4  ;;  %v973_v63 = vrot.slane %v971_v47, 5  ;;  %v1844_v5 = vld [vmem:[%s2263_s9 + $0xb8] sm:$0xf] }
  0x1e   : > { %1984 = vmatprep.mubr.msk.bf16.mxu1 %vm264_vm1, %v2168_v20  ;;  %v941_v50 = vrot.slane %v940_v39, 4  ;;  %v955_v54 = vrot.slane %v954_v46, 4  ;;  %v981_v56 = vrot.slane %v979_v49, 5  ;;  %v987_v0 = vrot.slane %v985_v53, 5  ;;  %v1845_v6 = vld [vmem:[%s2263_s9 + $0xbc] sm:$0x1] }
  0x1f   : > { %v968_v62 = vor.u32 %v967_v52, %v964_v51  ;;  %v990_v7 = vshrl.u32 %v1842_v1, 16  ;;  %v993_v8 = vshll.u32 %v1842_v1, 16  ;;  %v999_v12 = vshll.u32 %v1843_v2, 16  ;;  %v2171_v21 = vld [vmem:[%s2263_s9 + $0x30] ss:$8 sps:$4 sm:$0xff]  }
  0x20   : > { %v946_v61 = vsel %vm2304_vm4, %v941_v50, %v945_v33  ;;  %v960_v3 = vsel %vm2304_vm4, %v955_v54, %v959_v36  ;;  %v982_v4 = vor.u32 %v981_v56, %v978_v55  ;;  %v1004_v13 = vshrl.u32 %v1844_v5, 16  ;;  %v1846_v27 = vld [vmem:[%s2263_s9 + $0xc0] sm:$0xf]  ;;  %v1847_v28 = vld [vmem:[%s2263_s9 + $0xc4] sm:$0x1] }
  0x21   : > { %v1851_v9 = vcombine.low %v946_v61, %v960_v3  ;;  %v969_v11 = vrot.slane %v968_v62, 4  ;;  %v992_v15 = vrot.slane %v990_v7, 4  ;;  %v995_v16 = vrot.slane %v993_v8, 5  ;;  %v1848_v31 = vld [vmem:[%s2263_s9 + $0xc8] sm:$0xf] }
  0x22   : > { %v983_v14 = vrot.slane %v982_v4, 4  ;;  %v1007_v17 = vshll.u32 %v1844_v5, 16  ;;  %v1006_v19 = vrot.slane %v1004_v13, 4  ;;  %v1013_v20 = vshll.u32 %v1845_v6, 16  ;;  %v1849_v32 = vld [vmem:[%s2263_s9 + $0xcc] sm:$0x1] }
  0x23   : > { %2024 = vmatprep.mubr.msk.bf16.mxu0 %vm264_vm1, %v1851_v9  ;;  %v974_v18 = vsel %vm2304_vm4, %v969_v11, %v973_v63  ;;  %v2336_v22 = vsel %vm277_vm0, %v2313_v59, 0  ;;  %v996_v24 = vor.u32 %v995_v16, %v992_v15  ;;  %v1001_v25 = vrot.slane %v999_v12, 5  ;;  %v446_v38 = vld [vmem:[%s2263_s9] sm:$0xf]  ;;  %v447_v43 = vld [vmem:[%s2263_s9 + $0x4] sm:$0x1] }
  0x24   : > { %v988_v23 = vsel %vm2304_vm4, %v983_v14, %v987_v0  ;;  %v1009_v26 = vrot.slane %v1007_v17, 5  ;;  %v1015_v30 = vrot.slane %v1013_v20, 5  ;;  %v1018_v33 = vshrl.u32 %v1846_v27, 16  ;;  %v448_v49 = vld [vmem:[%s2263_s9 + $0x8] sm:$0xf] }
  0x25   : > { %1985 = vmatmul.mubr.msk.bf16.vlgmr.msra.gmra.mrb[0].mxu1 %vm264_vm1, %v2169_v40  ;;  %v1852_v29 = vcombine.low %v974_v18, %v988_v23  ;;  %v997_v34 = vrot.slane %v996_v24, 4  ;;  %v1021_v36 = vshll.u32 %v1846_v27, 16  ;;  %v1027_v37 = vshll.u32 %v1847_v28, 16  ;;  %v449_v53 = vld [vmem:[%s2263_s9 + $0xc] sm:$0x1] }
  0x26   : > { %1988 = vmatprep.mubr.msk.bf16.mxu1 %vm264_vm1, %v2170_v57  ;;  %1993 = vmatpush3.bf16.msra.mxu1 %v604_v58  ;;  %v1010_v35 = vor.u32 %v1009_v26, %v1006_v19  ;;  %v1020_v39 = vrot.slane %v1018_v33, 4  ;;  %v1032_v40 = vshrl.u32 %v1848_v31, 16  ;;  %v1035_v41 = vshll.u32 %v1848_v31, 16  ;;  %v450_v0 = vld [vmem:[%s2263_s9 + $0x10] sm:$0xf] }
  0x27   : > { %2141 = vmatprep.subr.msk.bf16.mxu1 %vm277_vm0, %v2318_v60  ;;  %2025 = vmatmul.mubr.msk.bf16.vlgmr.msra.gmra.mrb[0].mxu0 %vm264_vm1, %v1852_v29  ;;  %v1041_v42 = vshll.u32 %v1849_v32, 16  ;;  %v1002_v44 = vsel %vm2304_vm4, %v997_v34, %v1001_v25  ;;  %v1023_v47 = vrot.slane %v1021_v36, 5  ;;  %v1029_v48 = vrot.slane %v1027_v37, 5  ;;  %v451_v5 = vld [vmem:[%s2263_s9 + $0x14] sm:$0x1] }
  0x28   : > { %2033 = vmatpush3.bf16.msra.mxu0 %v2268_v10  ;;  %v1011_v46 = vrot.slane %v1010_v35, 4  ;;  %v1034_v50 = vrot.slane %v1032_v40, 4  ;;  %v1037_v51 = vrot.slane %v1035_v41, 5  ;;  %v466_v54 = vshrl.u32 %v446_v38, 16  ;;  %v2172_v8 = vld [vmem:[%s2263_s9 + $0x8] ss:$8 sps:$4 sm:$0xff]  }
  0x29   : > { %v1043_v52 = vrot.slane %v1041_v42, 5  ;;  %2145 = vmatprep.subr.msk.bf16.mxu0 %vm277_vm0, %v2313_v59  ;;  %v1024_v55 = vor.u32 %v1023_v47, %v1020_v39  ;;  %v469_v56 = vshll.u32 %v446_v38, 16  ;;  %v475_v57 = vshll.u32 %v447_v43, 16  ;;  %v452_v9 = vld [vmem:[%s2263_s9 + $0x18] sm:$0xf] }
  0x2a   : > { %v1016_v10 = vsel %vm2304_vm4, %v1011_v46, %v1015_v30  ;;  %v1038_v61 = vor.u32 %v1037_v51, %v1034_v50  ;;  %v468_v62 = vrot.slane %v466_v54, 4  ;;  %v480_v63 = vshrl.u32 %v448_v49, 16  ;;  %v453_v15 = vld [vmem:[%s2263_s9 + $0x1c] sm:$0x1]  ;;  %v454_v26 = vld [vmem:[%s2263_s9 + $0x20] sm:$0xf] }
  0x2b   : > { %v1853_v58 = vcombine.low %v1002_v44, %v1016_v10  ;;  %v1025_v1 = vrot.slane %v1024_v55, 4  ;;  %v471_v2 = vrot.slane %v469_v56, 5  ;;  %v477_v3 = vrot.slane %v475_v57, 5  ;;  %v455_v31 = vld [vmem:[%s2263_s9 + $0x24] sm:$0x1] }
  0x2c   : > { %v483_v4 = vshll.u32 %v448_v49, 16  ;;  %v1039_v59 = vrot.slane %v1038_v61, 4  ;;  %v482_v6 = vrot.slane %v480_v63, 4  ;;  %v489_v7 = vshll.u32 %v449_v53, 16  ;;  %v456_v35 = vld [vmem:[%s2263_s9 + $0x28] sm:$0xf] }
  0x2d   : > { %1989 = vmatmul.mubr.msk.bf16.gmra.mrb[4].mxu1 %vm264_vm1, %v2171_v21  ;;  %2028 = vmatprep.mubr.msk.bf16.mxu0 %vm264_vm1, %v1853_v58  ;;  %v494_v11 = vshrl.u32 %v450_v0, 16  ;;  %v1030_v12 = vsel %vm2304_vm4, %v1025_v1, %v1029_v48  ;;  %v472_v13 = vor.u32 %v471_v2, %v468_v62  ;;  %v497_v16 = vshll.u32 %v450_v0, 16  ;;  %v457_v36 = vld [vmem:[%s2263_s9 + $0x2c] sm:$0x1]  ;;  %v2173_v44 = vld [vmem:[%s2263_s9 + $0x18] ss:$8 sps:$4 sm:$0xff]  }
  0x2e   : > { %v485_v14 = vrot.slane %v483_v4, 5  ;;  %v1044_v17 = vsel %vm2304_vm4, %v1039_v59, %v1043_v52  ;;  %v491_v18 = vrot.slane %v489_v7, 5  ;;  %v503_v20 = vshll.u32 %v451_v5, 16  ;;  %v2174_v52 = vld [vmem:[%s2263_s9 + $0x28] ss:$8 sps:$4 sm:$0xff]  }
  0x2f   : > { %v496_v19 = vrot.slane %v494_v11, 4  ;;  %v1854_v21 = vcombine.low %v1030_v12, %v1044_v17  ;;  %v473_v23 = vrot.slane %v472_v13, 4  ;;  %v499_v25 = vrot.slane %v497_v16, 5  ;;  %v458_v53 = vld [vmem:[%s2263_s9 + $0x30] sm:$0xf] }
  0x30   : > { %v486_v24 = vor.u32 %v485_v14, %v482_v6  ;;  %v505_v27 = vrot.slane %v503_v20, 5  ;;  %v508_v28 = vshrl.u32 %v452_v9, 16  ;;  %v511_v29 = vshll.u32 %v452_v9, 16  ;;  %v459_v56 = vld [vmem:[%s2263_s9 + $0x34] sm:$0x1] }
  0x31   : > { %v517_v30 = vshll.u32 %v453_v15, 16  ;;  %2029 = vmatmul.mubr.msk.bf16.gmra.mrb[4].mxu0 %vm264_vm1, %v1854_v21  ;;  %v478_v32 = vsel %vm2304_vm4, %v473_v23, %v477_v3  ;;  %v500_v34 = vor.u32 %v499_v25, %v496_v19  ;;  %v522_v37 = vshrl.u32 %v454_v26, 16  ;;  %v460_v0 = vld [vmem:[%s2263_s9 + $0x38] sm:$0xf]  ;;  %v461_v1 = vld [vmem:[%s2263_s9 + $0x3c] sm:$0x1] }
  0x32   : > { %v487_v33 = vrot.slane %v486_v24, 4  ;;  %2034 = vmatprep.mubr.msk.bf16.mxu0 %vm264_vm1, %v2172_v8  ;;  %v510_v38 = vrot.slane %v508_v28, 4  ;;  %v513_v39 = vrot.slane %v511_v29, 5  ;;  %v525_v41 = vshll.u32 %v454_v26, 16  ;;  %v1909_v2 = vld [vmem:[%s2484_s1 + $0x10] sm:$0x3] }
  0x33   : > { %v519_v40 = vrot.slane %v517_v30, 5  ;;  %v501_v43 = vrot.slane %v500_v34, 4  ;;  %v524_v46 = vrot.slane %v522_v37, 4  ;;  %v531_v47 = vshll.u32 %v455_v31, 16  ;;  %v2175_v20 = vld [vmem:[%s2263_s9 + $0x38] ss:$8 sps:$4 sm:$0xff]  }
  0x34   : > { %v492_v42 = vsel %vm2304_vm4, %v487_v33, %v491_v18  ;;  %v514_v49 = vor.u32 %v513_v39, %v510_v38  ;;  %v527_v50 = vrot.slane %v525_v41, 5  ;;  %v536_v51 = vshrl.u32 %v456_v35, 16  ;;  %v2176_v33 = vld [vmem:[%s2263_s9 + $0x90] ss:$8 sps:$4 sm:$0xff]   ;;  %v1894_v38 = vld [vmem:[%s2263_s9 + $0xc] sm:$0x1] }
  0x35   : > { %v1792_v48 = vcombine.low %v478_v32, %v492_v42  ;;  %v533_v54 = vrot.slane %v531_v47, 5  ;;  %v539_v10 = vshll.u32 %v456_v35, 16  ;;  %v545_v55 = vshll.u32 %v457_v36, 16  ;;  %v2179_v35 = vld [vmem:[%s2263_s9 + $0x60] ss:$8 sps:$4 sm:$0xff]  }
  0x36   : > { %v723_v57 = vsel %vm277_vm0, %v2318_v60, 0  ;;  %v506_v58 = vsel %vm2304_vm4, %v501_v43, %v505_v27  ;;  %v515_v61 = vrot.slane %v514_v49, 4  ;;  %v528_v62 = vor.u32 %v527_v50, %v524_v46  ;;  %v1893_v36 = vld [vmem:[%s2263_s9 + $0x8] sm:$0xf]  ;;  %v2181_v37 = vld [vmem:[%s2263_s9 + $0x70] ss:$8 sps:$4 sm:$0xff]  }
  0x37   : > { %1994 = vmatprep.mubr.msk.bf16.mxu1 %vm264_vm1, %v1792_v48  ;;  %v538_v63 = vrot.slane %v536_v51, 4  ;;  %v541_v3 = vrot.slane %v539_v10, 5  ;;  %v547_v4 = vrot.slane %v545_v55, 5  ;;  %v550_v5 = vshrl.u32 %v458_v53, 16  ;;  %v1895_v39 = vld [vmem:[%s2263_s9 + $0x10] sm:$0xf] }
  0x38   : > { %v553_v59 = vshll.u32 %v458_v53, 16  ;;  %v520_v60 = vsel %vm2304_vm4, %v515_v61, %v519_v40  ;;  %v529_v6 = vrot.slane %v528_v62, 4  ;;  %v559_v7 = vshll.u32 %v459_v56, 16  ;;  %v1896_v40 = vld [vmem:[%s2263_s9 + $0x14] sm:$0x1] }
  0x39   : > { %v564_v8 = vshrl.u32 %v460_v0, 16  ;;  %v1793_v9 = vcombine.low %v506_v58, %v520_v60  ;;  %2035 = vmatmul.mubr.msk.bf16.vlgmr.msra.gmra.mrb[0].mxu0 %vm264_vm1, %v2173_v44  ;;  %v542_v11 = vor.u32 %v541_v3, %v538_v63  ;;  %v552_v12 = vrot.slane %v550_v5, 4  ;;  %v1897_v46 = vld [vmem:[%s2263_s9 + $0x18] sm:$0xf]  ;;  %v1898_v49 = vld [vmem:[%s2263_s9 + $0x1c] sm:$0x1] }
  0x3a   : > { %v555_v13 = vrot.slane %v553_v59, 5  ;;  %2043 = vmatpush3.bf16.msra.mxu0 %v2336_v22  ;;  %2038 = vmatprep.mubr.msk.bf16.mxu0 %vm264_vm1, %v2174_v52  ;;  %v567_v15 = vshll.u32 %v460_v0, 16  ;;  %v534_v16 = vsel %vm2304_vm4, %v529_v6, %v533_v54  ;;  %v573_v19 = vshll.u32 %v461_v1, 16  ;;  %v2177_v22 = vld [vmem:[%s2263_s9 + $0x50] ss:$8 sps:$4 sm:$0xff]  }
  0x3b   : > { %v566_v14 = vrot.slane %v564_v8, 4  ;;  %1995 = vmatmul.mubr.msk.bf16.vlgmr.msra.gmra.mrb[0].mxu1 %vm264_vm1, %v1793_v9  ;;  %v543_v17 = vrot.slane %v542_v11, 4  ;;  %2146 = vmatprep.subr.msk.bf16.mxu0 %vm277_vm0, %v1909_v2  ;;  %v561_v21 = vrot.slane %v559_v7, 5  ;;  %v1540_v31 = vsel %vm277_vm0, %v1909_v2, 0  ;;  %v1899_v50 = vld [vmem:[%s2263_s9 + $0x20] sm:$0xf] }
  0x3c   : > { %v556_v18 = vor.u32 %v555_v13, %v552_v12  ;;  %v569_v23 = vrot.slane %v567_v15, 5  ;;  %2003 = vmatpush3.bf16.msra.mxu1 %v723_v57  ;;  %v575_v28 = vrot.slane %v573_v19, 5  ;;  %v1402_v41 = vshrl.u32 %v1893_v36, 16  ;;  %v2178_v51 = vld [vmem:[%s2263_s9 + $0xa0] ss:$8 sps:$4 sm:$0xff]  }
  0x3d   : > { %v548_v24 = vsel %vm2304_vm4, %v543_v17, %v547_v4  ;;  %v1405_v42 = vshll.u32 %v1893_v36, 16  ;;  %v1411_v43 = vshll.u32 %v1894_v38, 16  ;;  %v1416_v44 = vshrl.u32 %v1895_v39, 16  ;;  %v1900_v55 = vld [vmem:[%s2263_s9 + $0x24] sm:$0x1] }
  0x3e   : > { %v557_v25 = vrot.slane %v556_v18, 4  ;;  %v1794_v26 = vcombine.low %v534_v16, %v548_v24  ;;  %v570_v27 = vor.u32 %v569_v23, %v566_v14  ;;  %v1419_v47 = vshll.u32 %v1895_v39, 16  ;;  %v2180_v56 = vld [vmem:[%s2263_s9 + $0xb0] ss:$8 sps:$4 sm:$0xff]   ;;  %v1901_v3 = vld [vmem:[%s2263_s9 + $0x28] sm:$0xf] }
  0x3f   : > { %v1425_v48 = vshll.u32 %v1896_v40, 16  ;;  %v1404_v52 = vrot.slane %v1402_v41, 4  ;;  %v1407_v53 = vrot.slane %v1405_v42, 5  ;;  %v1413_v54 = vrot.slane %v1411_v43, 5  ;;  %v1902_v6 = vld [vmem:[%s2263_s9 + $0x2c] sm:$0x1] }
  0x40   : > { %1998 = vmatprep.mubr.msk.bf16.mxu1 %vm264_vm1, %v1794_v26  ;;  %v562_v29 = vsel %vm2304_vm4, %v557_v25, %v561_v21  ;;  %v571_v30 = vrot.slane %v570_v27, 4  ;;  %v1418_v10 = vrot.slane %v1416_v44, 4  ;;  %v1421_v57 = vrot.slane %v1419_v47, 5  ;;  %v1903_v12 = vld [vmem:[%s2263_s9 + $0x30] sm:$0xf] }
  0x41   : > { %2039 = vmatmul.mubr.msk.bf16.gmra.mrb[4].mxu0 %vm264_vm1, %v2175_v20  ;;  %v1427_v58 = vrot.slane %v1425_v48, 5  ;;  %v1430_v61 = vshrl.u32 %v1897_v46, 16  ;;  %v1433_v62 = vshll.u32 %v1897_v46, 16  ;;  %v1408_v63 = vor.u32 %v1407_v53, %v1404_v52  ;;  %v2183_v17 = vld [vmem:[%s2263_s9 + $0x80] ss:$8 sps:$4 sm:$0xff]  }
  0x42   : > { %v576_v32 = vsel %vm2304_vm4, %v571_v30, %v575_v28  ;;  %2044 = vmatprep.mubr.msk.bf16.mxu0 %vm264_vm1, %v2177_v22  ;;  %v1439_v0 = vshll.u32 %v1898_v49, 16  ;;  %v1444_v1 = vshrl.u32 %v1899_v50, 16  ;;  %v1447_v2 = vshll.u32 %v1899_v50, 16  ;;  %v1904_v20 = vld [vmem:[%s2263_s9 + $0x34] sm:$0x1] }
  0x43   : > { %v1795_v34 = vcombine.low %v562_v29, %v576_v32  ;;  %v1422_v4 = vor.u32 %v1421_v57, %v1418_v10  ;;  %v1432_v5 = vrot.slane %v1430_v61, 4  ;;  %v1435_v59 = vrot.slane %v1433_v62, 5  ;;  %v1905_v27 = vld [vmem:[%s2263_s9 + $0x38] sm:$0xf]  ;;  %v2182_v28 = vld [vmem:[%s2263_s9 + $0xc0] ss:$8 sps:$4 sm:$0xff]  }
  0x44   : > { %v1453_v60 = vshll.u32 %v1900_v55, 16  ;;  %v1409_v7 = vrot.slane %v1408_v63, 4  ;;  %v1441_v8 = vrot.slane %v1439_v0, 5  ;;  %v1446_v9 = vrot.slane %v1444_v1, 4  ;;  %v1906_v32 = vld [vmem:[%s2263_s9 + $0x3c] sm:$0x1] }
  0x45   : > { %1999 = vmatmul.mubr.msk.bf16.gmra.mrb[4].mxu1 %vm264_vm1, %v1795_v34  ;;  %v1449_v11 = vrot.slane %v1447_v2, 5  ;;  %v1423_v13 = vrot.slane %v1422_v4, 4  ;;  %v1436_v14 = vor.u32 %v1435_v59, %v1432_v5  ;;  %v1458_v16 = vshrl.u32 %v1901_v3, 16  ;;  %v1907_v36 = vld [vmem:[%s2263_s9 + $0x40] sm:$0xf] }
  0x46   : > { %2004 = vmatprep.mubr.msk.bf16.mxu1 %vm264_vm1, %v2176_v33  ;;  %v1455_v15 = vrot.slane %v1453_v60, 5  ;;  %v1414_v18 = vsel %vm2304_vm4, %v1409_v7, %v1413_v54  ;;  %v1461_v21 = vshll.u32 %v1901_v3, 16  ;;  %v1467_v23 = vshll.u32 %v1902_v6, 16  ;;  %v1908_v39 = vld [vmem:[%s2263_s9 + $0x44] sm:$0x1] }
  0x47   : > { %v1450_v19 = vor.u32 %v1449_v11, %v1446_v9  ;;  %v1428_v22 = vsel %vm2304_vm4, %v1423_v13, %v1427_v58  ;;  %v1437_v24 = vrot.slane %v1436_v14, 4  ;;  %v1460_v25 = vrot.slane %v1458_v16, 4  ;;  %v1699_v7 = vld [vmem:[#allocation2] sm:$0x1] }
  0x48   : > { %v1472_v26 = vshrl.u32 %v1903_v12, 16  ;;  %v1910_v29 = vcombine.low %v1414_v18, %v1428_v22  ;;  %v1475_v34 = vshll.u32 %v1903_v12, 16  ;;  %v1469_v38 = vrot.slane %v1467_v23, 5  ;;  %v1918_v18 = vld [vmem:[%s2485_s2] ss:$0 sm:$0xff] }
  0x49   : > { %2045 = vmatmul.mubr.msk.bf16.vlgmr.msra.gmra.mrb[0].mxu0 %vm264_vm1, %v2179_v35  ;;  %v1451_v30 = vrot.slane %v1450_v19, 4  ;;  %v1481_v35 = vshll.u32 %v1904_v20, 16  ;;  %v1486_v40 = vshrl.u32 %v1905_v27, 16  ;;  %v1489_v41 = vshll.u32 %v1905_v27, 16 }
  0x4a   : > { %2053 = vmatpush3.bf16.msra.mxu0 %v1540_v31  ;;  %2048 = vmatprep.mubr.msk.bf16.mxu0 %vm264_vm1, %v2181_v37  ;;  %v1463_v31 = vrot.slane %v1461_v21, 5  ;;  %v1474_v33 = vrot.slane %v1472_v26, 4  ;;  %v1442_v42 = vsel %vm2304_vm4, %v1437_v24, %v1441_v8  ;;  %v1477_v44 = vrot.slane %v1475_v34, 5 }
  0x4b   : > { %v1456_v43 = vsel %vm2304_vm4, %v1451_v30, %v1455_v15  ;;  %v1495_v46 = vshll.u32 %v1906_v32, 16  ;;  %v1488_v48 = vrot.slane %v1486_v40, 4  ;;  %v1491_v49 = vrot.slane %v1489_v41, 5 }
  0x4c   : > { %v1464_v37 = vor.u32 %v1463_v31, %v1460_v25  ;;  %v1500_v50 = vshrl.u32 %v1907_v36, 16  ;;  %v1483_v52 = vrot.slane %v1481_v35, 5  ;;  %v1503_v53 = vshll.u32 %v1907_v36, 16 }
  0x4d   : > { %2005 = vmatmul.mubr.msk.bf16.vlgmr.msra.gmra.mrb[0].mxu1 %vm264_vm1, %v2178_v51  ;;  %v1478_v51 = vor.u32 %v1477_v44, %v1474_v33  ;;  %v1509_v54 = vshll.u32 %v1908_v39, 16  ;;  %v1911_v10 = vcombine.low %v1442_v42, %v1456_v43  ;;  %v1492_v55 = vor.u32 %v1491_v49, %v1488_v48 }
  0x4e   : > { %2008 = vmatprep.mubr.msk.bf16.mxu1 %vm264_vm1, %v2180_v56  ;;  %v1465_v47 = vrot.slane %v1464_v37, 4  ;;  %v1502_v56 = vrot.slane %v1500_v50, 4  ;;  %v1497_v61 = vrot.slane %v1495_v46, 5  ;;  %v1505_v62 = vrot.slane %v1503_v53, 5 }
  0x4f   : > { %v1479_v58 = vrot.slane %v1478_v51, 4  ;;  %v1493_v63 = vrot.slane %v1492_v55, 4  ;;  %v1511_v2 = vrot.slane %v1509_v54, 5  ;;  %v2192_v6 = vmov 0.0  }
  0x50   : > { %v1470_v57 = vsel %vm2304_vm4, %v1465_v47, %v1469_v38  ;;  %v1506_v1 = vor.u32 %v1505_v62, %v1502_v56  ;;  %2062 = vmatprep.subr.bf16.mxu1 %v2192_v6  ;;  %v2194_v8 = vmov 0  }
  0x51   : > { %2049 = vmatmul.mubr.msk.bf16.gmra.mrb[4].mxu0 %vm264_vm1, %v2183_v17  ;;  %v1484_v0 = vsel %vm2304_vm4, %v1479_v58, %v1483_v52  ;;  %v1498_v4 = vsel %vm2304_vm4, %v1493_v63, %v1497_v61  ;;  %2159 = vset.pattern.permute.xlu0 %v2194_v8  ;;  %v1642_v58 = vld [vmem:[%s2486_s3] sm:$0xf]  ;;  %v1705_v61 = vlaneseq }
  0x52   : > { %2054 = vmatprep.mubr.msk.bf16.mxu0 %vm264_vm1, %v1910_v29  ;;  %v1912_v3 = vcombine.low %v1470_v57, %v1484_v0  ;;  %v1507_v5 = vrot.slane %v1506_v1, 4  ;;  %1702 = vperm.xlu0 %2159, %v1699_v7  }
  0x53   : > { %v1706_v62 = vshrl.u32 %v1705_v61, 7 }
  0x54   : > { %v1512_v59 = vsel %vm2304_vm4, %v1507_v5, %v1511_v2 }
  0x55   : > { %2009 = vmatmul.mubr.msk.bf16.gmra.mrb[4].mxu1 %vm264_vm1, %v2182_v28  ;;  %v1913_v60 = vcombine.low %v1498_v4, %v1512_v59  ;;  %v1707_v63 = vsub.s32 0, %v1706_v62 }
  0x56   : > { %2070 = vmatprep.mubr.msk.bf16.mxu1 %vm2193_vm5, %v2192_v6 }
  0x59   : > { %2055 = vmatmul.mubr.msk.bf16.vlgmr.msra.gmra.mrb[0].mxu0 %vm264_vm1, %v1911_v10 }
  0x5a   : > { %2058 = vmatprep.mubr.msk.bf16.mxu0 %vm264_vm1, %v1912_v3 }
  0x61   : > { %2059 = vmatmul.mubr.msk.bf16.gmra.mrb[4].mxu0 %vm264_vm1, %v1913_v60 }
  0xd1   : > { %v1703_v0 = vpop.permute.xlu0 %1702 }
  0xd2   : > { %v1708_v1 = vrot.slane %v1703_v0, %v1707_v63 }
 0x120   : > { %v2006_v9 = vpop.f32.mrb[0].mxu1 }
 0x121   : > { %v759_v11 = vpop.f32.mrb[1].mxu1 }
 0x122   : > { %v2007_v12 = vpop.f32.mrb[2].mxu1 }
 0x123   : > { %v762_v13 = vpop.f32.mrb[3].mxu1 }
 0x128   : > { %v2010_v14 = vpop.f32.mrb[4].mxu1 }
 0x129   : > { %v775_v15 = vpop.f32.mrb[5].mxu1 }
 0x12a   : > { %v2011_v16 = vpop.f32.mrb[6].mxu1 }
 0x12b   : > { %v778_v45 = vpop.f32.mrb[7].mxu1 }
 0x12c   : > { %v2056_v17 = vpop.f32.mrb[0].mxu0 }
 0x12d   : > { %v2074_v19 = vadd.f32 %v2056_v17, %v2006_v9  ;;  %v1576_v20 = vpop.f32.mrb[1].mxu0 }
 0x12e   : > { %v2075_v21 = vadd.f32 %v1576_v20, %v759_v11  ;;  %v2057_v23 = vpop.f32.mrb[2].mxu0 }
 0x12f   : > { %v1624_v22 = vadd.f32 %v2074_v19, %v1918_v18  ;;  %v2076_v24 = vadd.f32 %v2057_v23, %v2007_v12  ;;  %v1579_v25 = vpop.f32.mrb[3].mxu0 }
 0x130   : > { %v1622_v26 = vadd.f32 %v2075_v21, %v1918_v18  ;;  %v2077_v27 = vadd.f32 %v1579_v25, %v762_v13 }
 0x131   : > { %v1625_v28 = vadd.f32 %v2076_v24, %v1918_v18  ;;  %v1632_v30 = vmax.f32 %v1624_v22, 0.0 }
 0x132   : > { %v1623_v29 = vadd.f32 %v2077_v27, %v1918_v18  ;;  %v1630_v32 = vmax.f32 %v1622_v26, 0.0 }
 0x133   : > { %v1633_v31 = vmax.f32 %v1625_v28, 0.0 }
 0x134   : > { %v1631_v33 = vmax.f32 %v1623_v29, 0.0  ;;  %v2060_v34 = vpop.f32.mrb[4].mxu0 }
 0x135   : > { %v1639_v35 = vpack.c.bf16 %v1633_v31, %v1632_v30  ;;  %v2078_v36 = vadd.f32 %v2060_v34, %v2010_v14  ;;  %v1592_v37 = vpop.f32.mrb[5].mxu0 }
 0x136   : > { %v1638_v38 = vpack.c.bf16 %v1631_v33, %v1630_v32  ;;  %v2079_v39 = vadd.f32 %v1592_v37, %v775_v15  ;;  %v2061_v40 = vpop.f32.mrb[6].mxu0 }
 0x137   : > { %v1628_v41 = vadd.f32 %v2078_v36, %v1918_v18  ;;  %v2080_v42 = vadd.f32 %v2061_v40, %v2011_v16  ;;  %v1595_v43 = vpop.f32.mrb[7].mxu0  ;;  %v1651_v55 = vsel %vm1643_vm6, %v1639_v35, 0 }
 0x138   : > { %v1626_v44 = vadd.f32 %v2079_v39, %v1918_v18  ;;  %v2081_v46 = vadd.f32 %v1595_v43, %v778_v45  ;;  %v1648_v47 = vsel %vm1643_vm6, %v1638_v38, 0 }
 0x139   : > { %v1629_v48 = vadd.f32 %v2080_v42, %v1918_v18  ;;  %2063 = vmatpush3.bf16.xpose.msra.mxu1 %v1648_v47  ;;  %v1636_v50 = vmax.f32 %v1628_v41, 0.0 }
 0x13a   : > { %v1627_v49 = vadd.f32 %v2081_v46, %v1918_v18  ;;  %2064 = vmatprep.subr.bf16.mxu1 %v2192_v6  ;;  %v1634_v52 = vmax.f32 %v1626_v44, 0.0 }
 0x13b   : > { %v1637_v51 = vmax.f32 %v1629_v48, 0.0 }
 0x13c   : > { %v1635_v53 = vmax.f32 %v1627_v49, 0.0 }
 0x13d   : > { %v1641_v54 = vpack.c.bf16 %v1637_v51, %v1636_v50 }
 0x13e   : > { %v1640_v10 = vpack.c.bf16 %v1635_v53, %v1634_v52 }
 0x13f   : > { %v1657_v57 = vsel %vm1643_vm6, %v1641_v54, 0 }
 0x140   : > { %v1654_v56 = vsel %vm1643_vm6, %v1640_v10, 0 }
 0x141   : > { %2065 = vmatpush3.bf16.xpose.msra.mxu1 %v1651_v55 }
 0x142   : > { %2066 = vmatprep.subr.bf16.mxu1 %v2192_v6 }
 0x149   : > { %2067 = vmatpush3.bf16.xpose.msra.mxu1 %v1654_v56 }
 0x14a   : > { %2068 = vmatprep.subr.bf16.mxu1 %v2192_v6 }
 0x151   : > { %2069 = vmatpush3.bf16.xpose.msra.mxu1 %v1657_v57 }
 0x158   : > { %2071 = vmatmul.mubr.msk.bf16.vlgmr.msra.gmra.mrb[8].mxu1 %vm1643_vm6, %v1642_v58 }
 0x22b   : > { %v1693_v2 = vpop.f32.mrb[8].mxu1 }
 0x22c   : > { %v1709_v3 = vadd.f32 %v1708_v1, %v1693_v2  ;;  %v2072_v4 = vpop.f32.mrb[9].mxu1 }
 0x22d   : > { %v1696_v5 = vpop.f32.mrb[10].mxu1 }
 0x22e   : > { %v1710_v59 = vmax.f32 %v1709_v3, 0.0  ;;  %v2073_v60 = vpop.f32.mrb[11].mxu1 }
 0x230   : > { %1712 = vst.msk [vmem:[%s222_s25] sm:$0x1] %vm1711_vm7, %v1710_v59 }
 0x231 PF: > { %s17_s20 = sadd.s32 1, %s2190_s20  }
 0x232   : > { %p14_p4 = scmp.ge.s32.totalorder %s17_s20, 4  }
 0x234   :  { %16 = sbr.rel (!%p14_p4) target bundleno = 3 (0x3), region = 83 }

</bundles_post_ra>
